<compile_context>
chip_gen: v5e
topology: v5e:2x2
jax: 0.10.0
libtpu: 0.0.40
codegen_flags: <defaults>
</compile_context>

<pallas_src>
import functools

import jax
import jax.numpy as jnp
from jax.experimental import pallas as pl
from jax.experimental.pallas import tpu as pltpu

_LANE = 128


def _vmem():
    return pl.BlockSpec(memory_space=pltpu.MemorySpace.VMEM)


def _smem():
    return pl.BlockSpec(memory_space=pltpu.MemorySpace.SMEM)


# ---------------------------------------------------------------------------
# Kernel 1: KDTH — KL(softmax(y_t/T) || softmax(y_s_th/T)) * T^2 / B
# ---------------------------------------------------------------------------
def _kdth_kernel(ys_th_ref, yt_ref, out_ref, *, T):
    inv_t = 1.0 / T
    zt = yt_ref[...] * inv_t                       # (B, NC)
    zs = ys_th_ref[...] * inv_t
    # stable log-softmax along the class (lane) axis
    mt = jnp.max(zt, axis=1, keepdims=True)
    log_pt = zt - (jnp.log(jnp.sum(jnp.exp(zt - mt), axis=1, keepdims=True)) + mt)
    ms = jnp.max(zs, axis=1, keepdims=True)
    log_ps = zs - (jnp.log(jnp.sum(jnp.exp(zs - ms), axis=1, keepdims=True)) + ms)
    p_t = jnp.exp(log_pt)
    # F.kl_div(log_ps, p_t, size_average=False) == sum(p_t * (log p_t - log_ps))
    kl = jnp.sum(p_t * (log_pt - log_ps))
    batch = ys_th_ref.shape[0]
    loss = kl * (T * T) / batch
    # lane-dense scalar output: broadcast across one 128-wide row
    out_ref[...] = jnp.full((1, _LANE), loss, jnp.float32)


def kdth_loss(y_s_th, y_t, T):
    kernel = functools.partial(_kdth_kernel, T=float(T))
    out = pl.pallas_call(
        kernel,
        out_shape=jax.ShapeDtypeStruct((1, _LANE), jnp.float32),
        in_specs=[_vmem(), _vmem()],
        out_specs=_vmem(),
    )(y_s_th.astype(jnp.float32), y_t.astype(jnp.float32))
    return out[0, 0]


# ---------------------------------------------------------------------------
# Kernel 2: Embed — Linear + L2 normalisation for both views, fused.
# ---------------------------------------------------------------------------
def _embed_kernel(fs_ref, ws_ref, bs_ref, ft_ref, wt_ref, bt_ref, vs_ref, vt_ref):
    es = jnp.dot(fs_ref[...], ws_ref[...],
                 preferred_element_type=jnp.float32) + bs_ref[...]
    vs_ref[...] = es / jnp.sqrt(jnp.sum(es * es, axis=1, keepdims=True))
    et = jnp.dot(ft_ref[...], wt_ref[...],
                 preferred_element_type=jnp.float32) + bt_ref[...]
    vt_ref[...] = et / jnp.sqrt(jnp.sum(et * et, axis=1, keepdims=True))


def embed_pair(f_s, w_s, b_s, f_t, w_t, b_t):
    B = f_s.shape[0]
    d = w_s.shape[1]
    return pl.pallas_call(
        _embed_kernel,
        out_shape=(jax.ShapeDtypeStruct((B, d), jnp.float32),
                   jax.ShapeDtypeStruct((B, d), jnp.float32)),
        in_specs=[_vmem()] * 6,
        out_specs=(_vmem(), _vmem()),
    )(f_s, w_s, b_s.reshape(1, d), f_t, w_t, b_t.reshape(1, d))


# ---------------------------------------------------------------------------
# Kernel 3: ContrastMemory scores + ContrastLoss (both views) + memory update.
# ---------------------------------------------------------------------------
def _crd_contrast_kernel(z_ref, vs_ref, vt_ref, w1_ref, w2_ref, p1_ref, p2_ref,
                         scal_ref, u1_ref, u2_ref,
                         *, nce_t, n_data, momentum):
    vs = vs_ref[...]                       # (B, d)      embedded student (view 1)
    vt = vt_ref[...]                       # (B, d)      embedded teacher (view 2)
    w1 = w1_ref[...]                       # (B, K+1, d) memory_v1 rows at idx
    w2 = w2_ref[...]                       # (B, K+1, d) memory_v2 rows at idx
    inv_t = 1.0 / nce_t

    # batched (K+1, d) @ (d,) mat-vecs: broadcast multiply (VPU) + lane reduce.
    out_v2 = jnp.exp(jnp.sum(w1 * vt[:, None, :], axis=-1) * inv_t)   # (B, K+1)
    out_v1 = jnp.exp(jnp.sum(w2 * vs[:, None, :], axis=-1) * inv_t)   # (B, K+1)

    # Z normalisers: if still "unset" (negative), initialise from this batch.
    z1 = jnp.where(z_ref[0] < 0.0, jnp.mean(out_v1) * n_data, z_ref[0])
    z2 = jnp.where(z_ref[1] < 0.0, jnp.mean(out_v2) * n_data, z_ref[1])
    out_v1 = out_v1 / z1
    out_v2 = out_v2 / z2

    batch = out_v1.shape[0]
    m = out_v1.shape[1] - 1                # number of negatives
    pn_m = m * (1.0 / n_data)
    eps = 1e-7

    def contrast_loss(x):
        denom = x + (pn_m + eps)
        log_d1 = jnp.log(x / denom)        # positive term (column 0)
        log_d0 = jnp.log(pn_m / denom)     # negative terms (columns 1..K)
        col = jax.lax.broadcasted_iota(jnp.int32, x.shape, 1)
        return -jnp.sum(jnp.where(col == 0, log_d1, log_d0)) / batch

    loss = contrast_loss(out_v1) + contrast_loss(out_v2)

    # scalar results packed into one lane-dense row:
    #   lane 0 = loss_crd, lane 1 = Z_v1, lane 2 = Z_v2 (rest = Z_v2 broadcast)
    lane = jax.lax.broadcasted_iota(jnp.int32, (1, _LANE), 1)
    scal_ref[...] = jnp.where(lane == 0, loss,
                              jnp.where(lane == 1, z1, z2)).astype(jnp.float32)

    # momentum update of the positive memory rows (scatter happens in wrapper)
    u1 = p1_ref[...] * momentum + vs * (1.0 - momentum)
    u1_ref[...] = u1 / jnp.sqrt(jnp.sum(u1 * u1, axis=1, keepdims=True))
    u2 = p2_ref[...] * momentum + vt * (1.0 - momentum)
    u2_ref[...] = u2 / jnp.sqrt(jnp.sum(u2 * u2, axis=1, keepdims=True))


def crd_contrast(v_s, v_t, w1, w2, pos1, pos2, z_pair, *, nce_t, n_data, momentum):
    B, d = v_s.shape
    kernel = functools.partial(_crd_contrast_kernel, nce_t=float(nce_t),
                               n_data=float(n_data), momentum=float(momentum))
    scal, u1, u2 = pl.pallas_call(
        kernel,
        out_shape=(jax.ShapeDtypeStruct((1, _LANE), jnp.float32),
                   jax.ShapeDtypeStruct((B, d), jnp.float32),
                   jax.ShapeDtypeStruct((B, d), jnp.float32)),
        in_specs=[_smem()] + [_vmem()] * 6,
        out_specs=(_vmem(), _vmem(), _vmem()),
    )(z_pair, v_s, v_t, w1, w2, pos1, pos2)
    return scal[0, 0], scal[0, 1:3], u1, u2


# ---------------------------------------------------------------------------
# Module wrappers mirroring CRDLoss / CRDTH.
# ---------------------------------------------------------------------------
class CRDLossPallas:
    """Pallas port of RepDistiller's CRDLoss (Embed + ContrastMemory + ContrastLoss)."""

    def __init__(self, key, opt):
        self.s_dim = int(opt.s_dim)
        self.t_dim = int(opt.t_dim)
        self.feat_dim = int(opt.feat_dim)
        self.n_data = int(opt.n_data)
        self.nce_k = int(opt.nce_k)
        self.nce_t = float(opt.nce_t)
        self.nce_m = float(opt.nce_m)
        ks = jax.random.split(key, 4)
        # Embed weights kept as (in, out) == nn.Linear.weight.T -> direct MXU dot.
        self.w_s = (jax.random.normal(ks[0], (self.s_dim, self.feat_dim), jnp.float32)
                    / jnp.sqrt(jnp.float32(self.s_dim)))
        self.b_s = jnp.zeros((self.feat_dim,), jnp.float32)
        self.w_t = (jax.random.normal(ks[1], (self.t_dim, self.feat_dim), jnp.float32)
                    / jnp.sqrt(jnp.float32(self.t_dim)))
        self.b_t = jnp.zeros((self.feat_dim,), jnp.float32)
        # ContrastMemory banks: uniform(-stdv, stdv), stdv = 1/sqrt(feat_dim/3).
        stdv = 1.0 / (self.feat_dim / 3.0) ** 0.5
        self.memory_v1 = jax.random.uniform(ks[2], (self.n_data, self.feat_dim),
                                            jnp.float32, -stdv, stdv)
        self.memory_v2 = jax.random.uniform(ks[3], (self.n_data, self.feat_dim),
                                            jnp.float32, -stdv, stdv)
        # Z_v1 / Z_v2 start "unset" (negative), like ContrastMemory.params[2:4].
        self.z = jnp.array([-1.0, -1.0], jnp.float32)

    def __call__(self, f_s, f_t, index, contrast_idx):
        B = f_s.shape[0]
        kp1 = contrast_idx.shape[1]
        d = self.feat_dim
        v_s, v_t = embed_pair(f_s.astype(jnp.float32), self.w_s, self.b_s,
                              f_t.astype(jnp.float32), self.w_t, self.b_t)
        # Data-dependent gather of the (K+1) memory rows per sample.
        # TODO(synk): for production-scale n_data/nce_k, grid the contrast kernel
        # over batch and DMA-gather the memory rows via a scalar-prefetch
        # index_map instead of materialising (B, K+1, d) here.
        flat_idx = contrast_idx.reshape(-1)
        w1 = jnp.take(self.memory_v1, flat_idx, axis=0).reshape(B, kp1, d)
        w2 = jnp.take(self.memory_v2, flat_idx, axis=0).reshape(B, kp1, d)
        pos1 = jnp.take(self.memory_v1, index, axis=0)
        pos2 = jnp.take(self.memory_v2, index, axis=0)
        loss, z_new, upd1, upd2 = crd_contrast(
            v_s, v_t, w1, w2, pos1, pos2, self.z,
            nce_t=self.nce_t, n_data=self.n_data, momentum=self.nce_m)
        # Side effects of ContrastMemory.forward: Z init + momentum memory
        # update (PyTorch index_copy_ -> .at[].set scatter in the wrapper).
        self.z = z_new
        self.memory_v1 = self.memory_v1.at[index].set(upd1)
        self.memory_v2 = self.memory_v2.at[index].set(upd2)
        return loss


class CRDTHPallas:
    """Combination of CRD and TH — mirrors CRDTH.forward."""

    def __init__(self, key, opt, T=4.0, th_weight=1.0):
        self.crd = CRDLossPallas(key, opt)
        self.T = float(T)
        self.th_weight = float(th_weight)

    def forward(self, y_s, y_t, f_s, f_t, index, contrast_idx):
        # y_s = [student logits, student logits through the frozen teacher head]
        loss_kdth = kdth_loss(y_s[1], y_t, self.T)
        loss_crd = self.crd(f_s, f_t, index, contrast_idx)
        return loss_crd + self.th_weight * loss_kdth


# ---------------------------------------------------------------------------
# Pure-JAX reference for a correctness check.
# ---------------------------------------------------------------------------
def _reference_crdth(model, y_s_pair, y_t, f_s, f_t, index, contrast_idx,
                     mem1, mem2, z_pair):
    hp = jax.lax.Precision.HIGHEST
    crd = model.crd
    # KDTH
    T = model.T
    log_pt = jax.nn.log_softmax(y_t / T, axis=1)
    p_t = jnp.exp(log_pt)
    log_ps = jax.nn.log_softmax(y_s_pair[1] / T, axis=1)
    loss_kdth = jnp.sum(p_t * (log_pt - log_ps)) * T * T / y_s_pair[0].shape[0]
    # CRD: embed
    vs = jnp.dot(f_s, crd.w_s, precision=hp) + crd.b_s
    vs = vs / jnp.sqrt(jnp.sum(vs ** 2, axis=1, keepdims=True))
    vt = jnp.dot(f_t, crd.w_t, precision=hp) + crd.b_t
    vt = vt / jnp.sqrt(jnp.sum(vt ** 2, axis=1, keepdims=True))
    # CRD: contrast memory
    w1 = mem1[contrast_idx]
    w2 = mem2[contrast_idx]
    out_v2 = jnp.exp(jnp.einsum('bkd,bd->bk', w1, vt, precision=hp) / crd.nce_t)
    out_v1 = jnp.exp(jnp.einsum('bkd,bd->bk', w2, vs, precision=hp) / crd.nce_t)
    z1 = jnp.where(z_pair[0] < 0, jnp.mean(out_v1) * crd.n_data, z_pair[0])
    z2 = jnp.where(z_pair[1] < 0, jnp.mean(out_v2) * crd.n_data, z_pair[1])
    out_v1 = out_v1 / z1
    out_v2 = out_v2 / z2

    def contrast_loss(x):
        bsz = x.shape[0]
        m = x.shape[1] - 1
        pn = 1.0 / crd.n_data
        eps = 1e-7
        log_d1 = jnp.log(x[:, 0] / (x[:, 0] + m * pn + eps))
        log_d0 = jnp.log((m * pn) / (x[:, 1:] + m * pn + eps))
        return -(jnp.sum(log_d1) + jnp.sum(log_d0)) / bsz

    loss_crd = contrast_loss(out_v1) + contrast_loss(out_v2)
    # CRD: memory momentum update
    u1 = mem1[index] * crd.nce_m + vs * (1.0 - crd.nce_m)
    u1 = u1 / jnp.sqrt(jnp.sum(u1 ** 2, axis=1, keepdims=True))
    u2 = mem2[index] * crd.nce_m + vt * (1.0 - crd.nce_m)
    u2 = u2 / jnp.sqrt(jnp.sum(u2 ** 2, axis=1, keepdims=True))
    total = loss_crd + model.th_weight * loss_kdth
    return total, jnp.stack([z1, z2]), u1, u2


if __name__ == "__main__":
    key = jax.random.PRNGKey(0)
    (k_model, k_ys, k_yth, k_yt, k_fs, k_ft, k_idx, k_neg) = jax.random.split(key, 8)

    class Opt:
        s_dim = 64        # student penultimate feature dim
        t_dim = 128       # teacher penultimate feature dim
        feat_dim = 128    # contrastive embedding dim (lane-dense)
        n_data = 256      # memory-bank size
        nce_k = 127       # negatives per sample -> K+1 = 128 (lane-dense)
        nce_t = 0.07
        nce_m = 0.5

    opt = Opt()
    B, NC = 8, 128
    y_s0 = jax.random.normal(k_ys, (B, NC), jnp.float32)     # student logits
    y_s_th = jax.random.normal(k_yth, (B, NC), jnp.float32)  # via teacher head
    y_t = jax.random.normal(k_yt, (B, NC), jnp.float32)      # teacher logits
    f_s = jax.random.normal(k_fs, (B, opt.s_dim), jnp.float32)
    f_t = jax.random.normal(k_ft, (B, opt.t_dim), jnp.float32)
    index = jax.random.permutation(k_idx, opt.n_data)[:B].astype(jnp.int32)
    negs = jax.random.randint(k_neg, (B, opt.nce_k), 0, opt.n_data, jnp.int32)
    contrast_idx = jnp.concatenate([index[:, None], negs], axis=1)  # col 0 = positive

    model = CRDTHPallas(k_model, opt, T=4.0, th_weight=1.0)

    # snapshot state for the pure-JAX reference (forward mutates memory / Z)
    mem1_0, mem2_0, z_0 = model.crd.memory_v1, model.crd.memory_v2, model.crd.z

    loss = model.forward([y_s0, y_s_th], y_t, f_s, f_t, index, contrast_idx)
    jax.block_until_ready(loss)

    ref_loss, ref_z, ref_u1, ref_u2 = _reference_crdth(
        model, [y_s0, y_s_th], y_t, f_s, f_t, index, contrast_idx,
        mem1_0, mem2_0, z_0)

    assert jnp.allclose(loss, ref_loss, rtol=5e-3, atol=5e-3), (loss, ref_loss)
    assert jnp.allclose(model.crd.z, ref_z, rtol=5e-3, atol=1e-2)
    assert jnp.allclose(model.crd.memory_v1[index], ref_u1, rtol=5e-3, atol=1e-3)
    assert jnp.allclose(model.crd.memory_v2[index], ref_u2, rtol=5e-3, atol=1e-3)

    print("KERNEL_OK")
</pallas_src>

<mosaic_0001>
module attributes {stable_mosaic.version = 11 : i64} {
  func.func @_kdth_kernel(%arg0: memref<8x128xf32, #tpu.memory_space<vmem>>, %arg1: memref<8x128xf32, #tpu.memory_space<vmem>>, %arg2: memref<1x128xf32, #tpu.memory_space<vmem>>) attributes {dimension_semantics = [], scalar_prefetch = 0 : i64, scratch_operands = 0 : i64, tpu.core_type = #tpu.core_type<tc>} {
    %c0 = arith.constant 0 : index
    %c0_0 = arith.constant 0 : index
    %0 = vector.load %arg1[%c0, %c0_0] : memref<8x128xf32, #tpu.memory_space<vmem>>, vector<8x128xf32>
    %cst = arith.constant 2.500000e-01 : f32
    %1 = vector.broadcast %cst : f32 to vector<8x128xf32>
    %2 = arith.mulf %0, %1 : vector<8x128xf32>
    %c0_1 = arith.constant 0 : index
    %c0_2 = arith.constant 0 : index
    %3 = vector.load %arg0[%c0_1, %c0_2] : memref<8x128xf32, #tpu.memory_space<vmem>>, vector<8x128xf32>
    %cst_3 = arith.constant 2.500000e-01 : f32
    %4 = vector.broadcast %cst_3 : f32 to vector<8x128xf32>
    %5 = arith.mulf %3, %4 : vector<8x128xf32>
    %cst_4 = arith.constant dense<0xFF800000> : vector<8xf32>
    %6 = vector.multi_reduction <maximumf>, %2, %cst_4 [1] : vector<8x128xf32> to vector<8xf32>
    %7 = vector.shape_cast %6 : vector<8xf32> to vector<8x1xf32>
    %8 = vector.broadcast %7 : vector<8x1xf32> to vector<8x128xf32>
    %9 = arith.subf %2, %8 : vector<8x128xf32>
    %10 = math.exp %9 : vector<8x128xf32>
    %cst_5 = arith.constant dense<0.000000e+00> : vector<8xf32>
    %11 = vector.multi_reduction <add>, %10, %cst_5 [1] : vector<8x128xf32> to vector<8xf32>
    %12 = vector.shape_cast %11 : vector<8xf32> to vector<8x1xf32>
    %13 = math.log %12 : vector<8x1xf32>
    %14 = arith.addf %13, %7 : vector<8x1xf32>
    %15 = vector.broadcast %14 : vector<8x1xf32> to vector<8x128xf32>
    %16 = arith.subf %2, %15 : vector<8x128xf32>
    %cst_6 = arith.constant dense<0xFF800000> : vector<8xf32>
    %17 = vector.multi_reduction <maximumf>, %5, %cst_6 [1] : vector<8x128xf32> to vector<8xf32>
    %18 = vector.shape_cast %17 : vector<8xf32> to vector<8x1xf32>
    %19 = vector.broadcast %18 : vector<8x1xf32> to vector<8x128xf32>
    %20 = arith.subf %5, %19 : vector<8x128xf32>
    %21 = math.exp %20 : vector<8x128xf32>
    %cst_7 = arith.constant dense<0.000000e+00> : vector<8xf32>
    %22 = vector.multi_reduction <add>, %21, %cst_7 [1] : vector<8x128xf32> to vector<8xf32>
    %23 = vector.shape_cast %22 : vector<8xf32> to vector<8x1xf32>
    %24 = math.log %23 : vector<8x1xf32>
    %25 = arith.addf %24, %18 : vector<8x1xf32>
    %26 = vector.broadcast %25 : vector<8x1xf32> to vector<8x128xf32>
    %27 = arith.subf %5, %26 : vector<8x128xf32>
    %28 = math.exp %16 : vector<8x128xf32>
    %29 = arith.subf %16, %27 : vector<8x128xf32>
    %30 = arith.mulf %28, %29 : vector<8x128xf32>
    %31 = vector.shape_cast %30 : vector<8x128xf32> to vector<1x8x128xf32>
    %cst_8 = arith.constant dense<0.000000e+00> : vector<1xf32>
    %32 = vector.multi_reduction <add>, %31, %cst_8 [1, 2] : vector<1x8x128xf32> to vector<1xf32>
    %33 = vector.shape_cast %32 : vector<1xf32> to vector<1x1x1xf32>
    %34 = vector.extract %33[0, 0, 0] : f32 from vector<1x1x1xf32>
    %cst_9 = arith.constant 1.600000e+01 : f32
    %35 = arith.mulf %34, %cst_9 : f32
    %cst_10 = arith.constant 8.000000e+00 : f32
    %36 = arith.divf %35, %cst_10 : f32
    %37 = vector.broadcast %36 : f32 to vector<1x128xf32>
    %c0_11 = arith.constant 0 : index
    %c0_12 = arith.constant 0 : index
    %38 = vector.load %arg2[%c0_11, %c0_12] : memref<1x128xf32, #tpu.memory_space<vmem>>, vector<1x128xf32>
    tpu.vector_store %arg2[%c0_11, %c0_12], %37 {strides = array<i32>} : memref<1x128xf32, #tpu.memory_space<vmem>>, vector<1x128xf32>,
    return
  }
}

</mosaic_0001>

<bundles_post_ra>
// kernel: tpu_custom_call.1
= control target key start
LH: loop header
LB: loop body
LE: loop exit
PB: predicated region body
PF: predicated region fallthrough
CT: control target
= control target key end

     0   :  { %7 = vsyncpa [#allocation3], 0  ;;  %s235_s0 = inlined_call_operand.hbm [shape: f32[8,128], index: 0, kind: input, shape index: {}]   ;;  %s236_s1 = inlined_call_operand.hbm [shape: f32[8,128], index: 1, kind: input, shape index: {}]   ;;  %s237_s2 = inlined_call_operand.hbm [shape: f32[1,128], index: 2, kind: output, shape index: {}]  }
   0x1   :  { %8 = vsyncpa [#allocation6], 0 }
   0x2   :  { %9 = vsyncpa [#allocation4], 0  ;;  %s15_s11 = sshll.u32 %s235_s0, 4  ;;  %s207_s12 = smov [#allocation2]   ;;  %s16_s11 = int_to_ptr.hbm [resolvable:$true] %s15_s11 }
   0x3   :  { %s17_s13 = sshll.u32 %s207_s12, 4  ;;  %s26_s16 = sshll.u32 %s236_s1, 4  ;;  %s18_s13 = int_to_ptr.vmem [resolvable:$true] %s17_s13  ;;  %s27_s16 = int_to_ptr.hbm [resolvable:$true] %s26_s16 }
   0x4   :  { %20 = dma.hbm_to_vmem [thread:$0]  %s16_s11, 128, %s18_s13, [#allocation3]  }
   0x5   :  { %s208_s17 = smov [#allocation5]  }
   0x6   :  { %s28_s18 = sshll.u32 %s208_s17, 4  ;;  %s29_s18 = int_to_ptr.vmem [resolvable:$true] %s28_s18 }
   0x7   :  { %31 = dma.hbm_to_vmem [thread:$0]  %s27_s16, 128, %s29_s18, [#allocation6]  }
   0x8   :  { %201 = dma.done.wait [#allocation3], 128  }
   0x9   :  { %202 = vsyncadd [#allocation3], 4294967168 }
   0xa   :  { %203 = dma.done.wait [#allocation6], 128  }
   0xb   :  { %204 = vsyncadd [#allocation6], 4294967168  ;;  %v40_v0 = vld [vmem:[#allocation5] sm:$0xff]  ;;  %v42_v2 = vld [vmem:[#allocation2] sm:$0xff]  ;;  %v209_v26 = vmov 8.0   ;;  %s210_s0 = smov [#allocation7]  }
   0xc   :  { %v41_v1 = vmul.f32 0.25, %v40_v0  ;;  %v43_v3 = vmul.f32 0.25, %v42_v2  ;;  %s96_s1 = sshll.u32 %s210_s0, 4  ;;  %s98_s22 = sshll.u32 %s237_s2, 4  ;;  %s97_s1 = int_to_ptr.vmem [resolvable:$true] %s96_s1  ;;  %s99_s22 = int_to_ptr.hbm [resolvable:$true] %s98_s22 }
   0xe   :  { %44 = vmax.xlane.f32.xlu0 %v41_v1 }
  0x16   :  { %55 = vmax.xlane.f32.xlu0 %v43_v3 }
  0x81   :  { %v45_v4 = vpop.xlane.xlu0 %44 }
  0x82   :  { %v46_v5 = vsub.f32 %v41_v1, %v45_v4 }
  0x84   :  { %v47_v6 = vmul.f32 1.442695, %v46_v5 }
  0x86   :  { %117 = vpow2.f32 %v47_v6 }
  0x89   :  { %v56_v7 = vpop.xlane.xlu0 %55 }
  0x8a   :  { %v57_v8 = vsub.f32 %v43_v3, %v56_v7 }
  0x8c   :  { %v118_v9 = vpop.eup %117  ;;  %v58_v10 = vmul.f32 1.442695, %v57_v8 }
  0x8d   :  { %49 = vadd.xlane.f32.xlu1 %v118_v9 }
  0x8e   :  { %119 = vpow2.f32 %v58_v10 }
  0x94   :  { %v120_v11 = vpop.eup %119 }
  0x95   :  { %60 = vadd.xlane.f32.xlu1 %v120_v11 }
 0x100   :  { %v50_v12 = vpop.xlane.xlu1 %49 }
 0x101   :  { %121 = vlog2.f32 %v50_v12 }
 0x107   :  { %v122_v13 = vpop.eup %121 }
 0x108   :  { %v52_v14 = vmul.f32 0.6931472, %v122_v13  ;;  %v61_v15 = vpop.xlane.xlu1 %60 }
 0x109   :  { %123 = vlog2.f32 %v61_v15 }
 0x10a   :  { %v53_v16 = vadd.f32 %v52_v14, %v45_v4 }
 0x10c   :  { %v54_v17 = vsub.f32 %v41_v1, %v53_v16 }
 0x10e   :  { %v66_v18 = vmul.f32 1.442695, %v54_v17 }
 0x10f   :  { %v124_v19 = vpop.eup %123 }
 0x110   :  { %v63_v20 = vmul.f32 0.6931472, %v124_v19  ;;  %125 = vpow2.f32 %v66_v18 }
 0x111   :  { %127 = vrcp.f32 %v209_v26 }
 0x112   :  { %v64_v21 = vadd.f32 %v63_v20, %v56_v7 }
 0x114   :  { %v65_v22 = vsub.f32 %v43_v3, %v64_v21 }
 0x116   :  { %v126_v23 = vpop.eup %125  ;;  %v68_v24 = vsub.f32 %v54_v17, %v65_v22 }
 0x117   :  { %v128_v27 = vpop.eup %127 }
 0x118   :  { %v69_v25 = vmul.f32 %v126_v23, %v68_v24  ;;  %v81_v28 = vmul.f32 8.0, %v128_v27  ;;  %vm85_vm0 = vweird.f32 %v128_v27 }
 0x11a   :  { %70 = vadd.xlane.f32.xlu2 %v69_v25  ;;  %v82_v29 = vsub.f32 1.0, %v81_v28 }
 0x11c   :  { %v83_v33 = vmul.f32 %v128_v27, %v82_v29 }
 0x11e   :  { %v84_v36 = vadd.f32 %v128_v27, %v83_v33 }
 0x120   :  { %v86_v39 = vsel %vm85_vm0, %v128_v27, %v84_v36 }
 0x18d   :  { %v71_v30 = vpop.xlane.xlu2 %70 }
 0x18e   :  { %v72_v31 = vrot.slane %v71_v30, 4 }
 0x190   :  { %v73_v32 = vadd.f32 %v72_v31, %v71_v30 }
 0x192   :  { %v74_v34 = vrot.slane %v73_v32, 2 }
 0x194   :  { %v75_v35 = vadd.f32 %v74_v34, %v73_v32 }
 0x196   :  { %v76_v37 = vrot.slane %v75_v35, 1 }
 0x198   :  { %v77_v38 = vadd.f32 %v76_v37, %v75_v35 }
 0x19a   :  { %109 = vpush %v77_v38 }
 0x19b   :  { %111 = vpush %v86_v39 }
 0x1cb   :  { %s110_s19 = spop %109 }
 0x1cc   :  { %s79_s23 = smul.f32 16.0, %s110_s19  ;;  %s112_s24 = spop %111 }
 0x1ce   :  { %s88_s25 = smul.f32 %s112_s24, %s79_s23 }
 0x1d0   :  { %v89_v40 = vstv %s88_s25 }
 0x1d1   :  { %90 = vst [vmem:[#allocation7] sm:$0x1] %v89_v40 }
 0x1d2   :  { %101 = dma.vmem_to_hbm [thread:$0]  %s97_s1, 16, %s99_s22, [#allocation4]  }
 0x1d3   :  { %205 = dma.done.wait [#allocation4], 16  }
 0x1d4   :  { %206 = vsyncadd [#allocation4], 4294967280 }
 0x1d5   :  { %106 = vsyncpa [#allocation3], 1 }
 0x1d6   :  { %107 = vsyncpa [#allocation6], 1 }
 0x1d7   :  { %108 = vsyncpa [#allocation4], 1 }

</bundles_post_ra>
